<compile_context>
chip_gen: v6e
topology: v6e:2x2x1
jax: 0.10.0
libtpu: 0.0.40
codegen_flags: <defaults>
</compile_context>

<pallas_src>
import functools

import jax
import jax.numpy as jnp
from jax.experimental import pallas as pl
from jax.experimental.pallas import tpu as pltpu


def _leaky_relu(x, negative_slope=0.01):
    # For 0 < slope < 1, max(x, slope*x) == leaky_relu(x); cheaper than where().
    return jnp.maximum(x, negative_slope * x)


def _subgoal_emb_kernel(x_ref, w1_ref, b1_ref, w2_ref, b2_ref, o_ref, *, compute_dtype):
    # x:  (TB, D)   w1: (D, 64)  b1: (1, 64)
    # h:  (TB, 64)  w2: (64, 32) b2: (1, 32)
    # o:  (TB, 32)
    x = x_ref[...].astype(compute_dtype)
    w1 = w1_ref[...].astype(compute_dtype)
    h = jnp.dot(x, w1, preferred_element_type=jnp.float32) + b1_ref[...]
    h = _leaky_relu(h)
    w2 = w2_ref[...].astype(compute_dtype)
    y = jnp.dot(h.astype(compute_dtype), w2, preferred_element_type=jnp.float32) + b2_ref[...]
    y = _leaky_relu(y)
    o_ref[...] = y.astype(o_ref.dtype)


def subgoal_emb(state, w1, b1, w2, b2, *, block_b=512, use_bf16_matmul=False):
    """Forward pass of subgoalEMB.

    state: (B, state_dim) float32
    w1: (state_dim, 64), b1: (64,)
    w2: (64, 32),        b2: (32,)
    returns: (B, 32) float32
    """
    B, D = state.shape
    H1 = w1.shape[1]
    H2 = w2.shape[1]
    b1_2d = b1.reshape(1, H1)
    b2_2d = b2.reshape(1, H2)

    compute_dtype = jnp.bfloat16 if use_bf16_matmul else jnp.float32
    kernel = functools.partial(_subgoal_emb_kernel, compute_dtype=compute_dtype)
    out_shape = jax.ShapeDtypeStruct((B, H2), jnp.float32)

    if B <= block_b:
        # Small batch: single invocation, no grid machinery, everything resident in VMEM.
        return pl.pallas_call(
            kernel,
            out_shape=out_shape,
            in_specs=[pl.BlockSpec(memory_space=pltpu.MemorySpace.VMEM)] * 5,
            out_specs=pl.BlockSpec(memory_space=pltpu.MemorySpace.VMEM),
        )(state, w1, b1_2d, w2, b2_2d)

    # Large batch: tile the batch axis; weights/biases use a constant block index so
    # they are fetched once and stay resident across all grid steps.
    tb = block_b  # multiple of 8 (sublane rule); 512 rows ≈ 85% of HBM roofline.
    # TODO(synk): lane-dense (B//4, 128) output slab skipped — the in-kernel
    # (TB,32)->(TB//4,128) relayout would burn XLU shuffles for a 32-wide MLP.
    return pl.pallas_call(
        kernel,
        out_shape=out_shape,
        grid=(pl.cdiv(B, tb),),
        in_specs=[
            pl.BlockSpec((tb, D), lambda i: (i, 0)),
            pl.BlockSpec((D, H1), lambda i: (0, 0)),
            pl.BlockSpec((1, H1), lambda i: (0, 0)),
            pl.BlockSpec((H1, H2), lambda i: (0, 0)),
            pl.BlockSpec((1, H2), lambda i: (0, 0)),
        ],
        out_specs=pl.BlockSpec((tb, H2), lambda i: (i, 0)),
        compiler_params=pltpu.CompilerParams(
            dimension_semantics=("parallel",),  # batch axis shards across v7x's 2 TCs
        ),
    )(state, w1, b1_2d, w2, b2_2d)


def init_params(state_dim, key):
    """Deterministic init mimicking PyTorch nn.Linear default (uniform ±1/sqrt(fan_in))."""
    k1, k2, k3, k4 = jax.random.split(key, 4)
    bound1 = 1.0 / jnp.sqrt(state_dim)
    bound2 = 1.0 / jnp.sqrt(64.0)
    w1 = jax.random.uniform(k1, (state_dim, 64), jnp.float32, -bound1, bound1)
    b1 = jax.random.uniform(k2, (64,), jnp.float32, -bound1, bound1)
    w2 = jax.random.uniform(k3, (64, 32), jnp.float32, -bound2, bound2)
    b2 = jax.random.uniform(k4, (32,), jnp.float32, -bound2, bound2)
    return w1, b1, w2, b2


if __name__ == "__main__":
    key = jax.random.PRNGKey(0)
    k_state, k_params, k_big = jax.random.split(key, 3)

    state_dim = 32
    w1, b1, w2, b2 = init_params(state_dim, k_params)

    def ref_forward(x):
        def leaky(v):
            return jnp.where(v >= 0, v, 0.01 * v)
        return leaky(leaky(x @ w1 + b1) @ w2 + b2)

    # --- Small-batch path: no grid, fully VMEM-resident. ---
    batch = 8
    state = jax.random.normal(k_state, (batch, state_dim), jnp.float32)
    out = jax.block_until_ready(subgoal_emb(state, w1, b1, w2, b2))
    assert out.shape == (batch, 32)
    assert jnp.allclose(out, ref_forward(state), atol=1e-5, rtol=1e-5)

    # --- Large-batch path: batch-tiled grid, parallel dimension semantics. ---
    big_batch = 1024
    big_state = jax.random.normal(k_big, (big_batch, state_dim), jnp.float32)
    big_out = jax.block_until_ready(
        subgoal_emb(big_state, w1, b1, w2, b2, block_b=512))
    assert big_out.shape == (big_batch, 32)
    assert jnp.allclose(big_out, ref_forward(big_state), atol=1e-5, rtol=1e-5)

    # --- Optional bf16-input matmul path (f32 accumulation), looser tolerance. ---
    bf16_out = jax.block_until_ready(
        subgoal_emb(big_state, w1, b1, w2, b2, block_b=512, use_bf16_matmul=True))
    assert jnp.allclose(bf16_out, ref_forward(big_state), atol=5e-2, rtol=5e-2)

    print("KERNEL_OK")
</pallas_src>

<mosaic_0001>
module attributes {stable_mosaic.version = 11 : i64} {
  func.func @_subgoal_emb_kernel(%arg0: memref<8x32xf32, #tpu.memory_space<vmem>>, %arg1: memref<32x64xf32, #tpu.memory_space<vmem>>, %arg2: memref<1x64xf32, #tpu.memory_space<vmem>>, %arg3: memref<64x32xf32, #tpu.memory_space<vmem>>, %arg4: memref<1x32xf32, #tpu.memory_space<vmem>>, %arg5: memref<8x32xf32, #tpu.memory_space<vmem>>) attributes {dimension_semantics = [], scalar_prefetch = 0 : i64, scratch_operands = 0 : i64, tpu.core_type = #tpu.core_type<tc>} {
    %c0 = arith.constant 0 : index
    %c0_0 = arith.constant 0 : index
    %0 = vector.load %arg0[%c0, %c0_0] : memref<8x32xf32, #tpu.memory_space<vmem>>, vector<8x32xf32>
    %c0_1 = arith.constant 0 : index
    %c0_2 = arith.constant 0 : index
    %1 = vector.load %arg1[%c0_1, %c0_2] : memref<32x64xf32, #tpu.memory_space<vmem>>, vector<32x64xf32>
    %cst = arith.constant dense<0.000000e+00> : vector<8x64xf32>
    %2 = tpu.matmul %0, %1, %cst {dimension_numbers = #tpu.dot_dimension_numbers<[1], [0], [0], [1], [0, 0, 1, 1], [], []>} : vector<8x32xf32>, vector<32x64xf32>, vector<8x64xf32> -> vector<8x64xf32>
    %c0_3 = arith.constant 0 : index
    %c0_4 = arith.constant 0 : index
    %3 = vector.load %arg2[%c0_3, %c0_4] : memref<1x64xf32, #tpu.memory_space<vmem>>, vector<1x64xf32>
    %4 = vector.broadcast %3 : vector<1x64xf32> to vector<8x64xf32>
    %5 = arith.addf %2, %4 : vector<8x64xf32>
    %cst_5 = arith.constant 0.00999999977 : f32
    %6 = vector.broadcast %cst_5 : f32 to vector<8x64xf32>
    %7 = arith.mulf %6, %5 : vector<8x64xf32>
    %8 = arith.maximumf %5, %7 : vector<8x64xf32>
    %c0_6 = arith.constant 0 : index
    %c0_7 = arith.constant 0 : index
    %9 = vector.load %arg3[%c0_6, %c0_7] : memref<64x32xf32, #tpu.memory_space<vmem>>, vector<64x32xf32>
    %cst_8 = arith.constant dense<0.000000e+00> : vector<8x32xf32>
    %10 = tpu.matmul %8, %9, %cst_8 {dimension_numbers = #tpu.dot_dimension_numbers<[1], [0], [0], [1], [0, 0, 1, 1], [], []>} : vector<8x64xf32>, vector<64x32xf32>, vector<8x32xf32> -> vector<8x32xf32>
    %c0_9 = arith.constant 0 : index
    %c0_10 = arith.constant 0 : index
    %11 = vector.load %arg4[%c0_9, %c0_10] : memref<1x32xf32, #tpu.memory_space<vmem>>, vector<1x32xf32>
    %12 = vector.broadcast %11 : vector<1x32xf32> to vector<8x32xf32>
    %13 = arith.addf %10, %12 : vector<8x32xf32>
    %cst_11 = arith.constant 0.00999999977 : f32
    %14 = vector.broadcast %cst_11 : f32 to vector<8x32xf32>
    %15 = arith.mulf %14, %13 : vector<8x32xf32>
    %16 = arith.maximumf %13, %15 : vector<8x32xf32>
    %c0_12 = arith.constant 0 : index
    %c0_13 = arith.constant 0 : index
    %17 = vector.load %arg5[%c0_12, %c0_13] : memref<8x32xf32, #tpu.memory_space<vmem>>, vector<8x32xf32>
    tpu.vector_store %arg5[%c0_12, %c0_13], %16 {strides = array<i32>} : memref<8x32xf32, #tpu.memory_space<vmem>>, vector<8x32xf32>,
    return
  }
}

</mosaic_0001>

<bundles_post_ra>
// kernel: tpu_custom_call.1
= control target key start
LH: loop header
LB: loop body
LE: loop exit
PB: predicated region body
PF: predicated region fallthrough
CT: control target
= control target key end

     0   :  { %v288_v1 = vmov 0.0   ;;  %vm289_vm0 = vmmov 0   ;;  %s373_s0 = inlined_call_operand.vmem [shape: f32[8,32], index: 0, kind: input, shape index: {}]   ;;  %s374_s1 = inlined_call_operand.vmem [shape: f32[32,64], index: 1, kind: input, shape index: {}]   ;;  %s375_s2 = inlined_call_operand.vmem [shape: f32[1,64], index: 2, kind: input, shape index: {}]   ;;  %s376_s3 = inlined_call_operand.vmem [shape: f32[64,32], index: 3, kind: input, shape index: {}]   ;;  %s377_s4 = inlined_call_operand.vmem [shape: f32[1,32], index: 4, kind: input, shape index: {}]   ;;  %s378_s5 = inlined_call_operand.hbm [shape: f32[8,32], index: 5, kind: output, shape index: {}]  }
   0x1   :  { %v25_v0 = vld [vmem:[%s374_s1 + $0x18] sm:$0xff]  ;;  %233 = vmatprep.subr.mxu0 %v288_v1  ;;  %v24_v2 = vld [vmem:[%s374_s1 + $0x10] sm:$0xff]  ;;  %241 = vmatprep.mubr.msk.f32.mxu0 %vm289_vm0, %v288_v1  ;;  %v23_v5 = vld [vmem:[%s374_s1 + $0x8] sm:$0xff] }
   0x2   :  { %v116_v3 = vld [vmem:[%s376_s3 + $0x38] sm:$0xff]  ;;  %234 = vmatpush3.msra.mxu0 %v25_v0  ;;  %244 = vmatprep.subr.mxu1 %v288_v1  ;;  %v115_v4 = vld [vmem:[%s376_s3 + $0x30] sm:$0xff] }
   0x3   :  { %235 = vmatprep.subr.mxu0 %v288_v1  ;;  %245 = vmatpush3.msra.mxu1 %v116_v3 }
   0x4   :  { %10 = vsyncpa [#allocation3], 0  ;;  %236 = vmatpush3.msra.mxu0 %v24_v2  ;;  %246 = vmatprep.subr.mxu1 %v288_v1  ;;  %v114_v6 = vld [vmem:[%s376_s3 + $0x28] sm:$0xff]  ;;  %v22_v7 = vld [vmem:[%s374_s1] sm:$0xff]  ;;  %vm33_vm1 = vcmask 261120   ;;  %vm124_vm2 = vcmask 523264  }
   0x5   :  { %237 = vmatprep.subr.mxu0 %v288_v1  ;;  %247 = vmatpush3.msra.mxu1 %v115_v4  ;;  %v21_v8 = vld [vmem:[%s373_s0] sm:$0xff]  ;;  %v112_v10 = vld [vmem:[%s376_s3 + $0x18] sm:$0xff]  ;;  %v111_v11 = vld [vmem:[%s376_s3 + $0x10] sm:$0xff] }
   0x6   :  { %238 = vmatpush3.msra.mxu0 %v23_v5  ;;  %248 = vmatprep.subr.mxu1 %v288_v1  ;;  %v113_v9 = vld [vmem:[%s376_s3 + $0x20] sm:$0xff]  ;;  %v110_v12 = vld [vmem:[%s376_s3 + $0x8] sm:$0xff] }
   0x7   :  { %239 = vmatprep.subr.mxu0 %v288_v1  ;;  %249 = vmatpush3.msra.mxu1 %v114_v6  ;;  %v109_v13 = vld [vmem:[%s376_s3] sm:$0xff]  ;;  %s290_s3 = smov [#allocation2]  }
   0x8   :  { %240 = vmatpush3.msra.mxu0 %v22_v7  ;;  %250 = vmatprep.subr.mxu1 %v288_v1  ;;  %v215_v14 = vld [vmem:[%s375_s2] ss:$0 sm:$0xff]  ;;  %s207_s21 = sshll.u32 %s290_s3, 4  ;;  %s208_s21 = int_to_ptr.vmem [resolvable:$true] %s207_s21 }
   0x9   :  { %242 = vmatmul.mubr.msk.f32.vlgmr.msra.gmra.mxu0 %vm33_vm1, %v21_v8  ;;  %251 = vmatpush3.msra.mxu1 %v113_v9  ;;  %v217_v20 = vld [vmem:[%s377_s4] ss:$0 sm:$0xff]  ;;  %s266_s2 = scalar_lea.vmem %s208_s21, 128  ;;  %p271_p1 = scmp.lt.s32.totalorder %s208_s21, %s208_s21 }
   0xa   :  { %252 = vmatprep.subr.mxu1 %v288_v1  ;;  %260 = vmatprep.mubr.msk.f32.mxu1 %vm289_vm0, %v288_v1  ;;  %p267_p0 = scmp.ne.s32.totalorder %s208_s21, %s266_s2  ;;  %p272_p2 = scmp.lt.s32.totalorder %s266_s2, %s266_s2 }
   0xb   :  { %253 = vmatpush3.msra.mxu1 %v112_v10 }
   0xc   :  { %254 = vmatprep.subr.mxu1 %v288_v1  ;;  %p273_p3 = por %p272_p2, %p271_p1 }
   0xd   :  { %255 = vmatpush3.msra.mxu1 %v111_v11 }
   0xe   :  { %256 = vmatprep.subr.mxu1 %v288_v1  ;;  %p274_p4 = pnand %p273_p3, %p267_p0 }
   0xf   :  { %257 = vmatpush3.msra.mxu1 %v110_v12 }
  0x10   :  { %258 = vmatprep.subr.mxu1 %v288_v1 }
  0x11   :  { %259 = vmatpush3.msra.mxu1 %v109_v13 }
  0xc9   :  { %v103_v15 = vpop.f32.mrf.mxu0 }
  0xca   :  { %v104_v16 = vadd.f32 %v215_v14, %v103_v15 }
  0xcb   :  { %v243_v17 = vpop.f32.mrf.mxu0 }
  0xcc   :  { %v107_v18 = vmul.f32 0.01, %v104_v16 }
  0xce   :  { %v108_v19 = vmax.f32 %v104_v16, %v107_v18 }
  0xd0   :  { %261 = vmatmul.mubr.msk.f32.vlgmr.msra.gmra.mxu1 %vm124_vm2, %v108_v19 }
 0x190   :  { %v194_v21 = vpop.f32.mrf.mxu1 }
 0x191   :  { %v195_v22 = vadd.f32 %v217_v20, %v194_v21 }
 0x192   :  { %v262_v23 = vpop.f32.mrf.mxu1 }
 0x193   :  { %v198_v24 = vmul.f32 0.01, %v195_v22 }
 0x195   :  { %v199_v25 = vmax.f32 %v195_v22, %v198_v24 }
 0x197   :  { %200 = vst.msk [vmem:[#allocation2] sm:$0xff] %vm33_vm1, %v199_v25 }
 0x198   :  { %277 = shalt.err (!%p274_p4)
}
 0x199   :  { %210 = dma.vmem_to_hbm [thread:$0]  %s208_s21, 128, %s378_s5, [#allocation3]  }
 0x19a   :  { %286 = dma.done.wait [#allocation3], 128  }
 0x19b   :  { %287 = vsyncadd [#allocation3], 4294967168 }
 0x19c   :  { %214 = vsyncpa [#allocation3], 1 }

</bundles_post_ra>
